<compile_context>
chip_gen: v7x
topology: tpu7x:2x2x1
jax: 0.10.0
libtpu: 0.0.40
codegen_flags: <defaults>
</compile_context>

<pallas_src>
import functools

import jax
import jax.numpy as jnp
from jax.experimental import pallas as pl
from jax.experimental.pallas import tpu as pltpu

_LN_EPS = 1e-5


def _round_up(n, m):
    return ((n + m - 1) // m) * m


def _qnet_duel_kernel(x_ref, w1_ref, vecs_ref, wq_ref, bq_ref, out_ref, *, inv_h):
    # linear1: bf16 x bf16 -> f32 accumulate on the MXU.
    h = jnp.dot(x_ref[...], w1_ref[...], preferred_element_type=jnp.float32)
    h = h + vecs_ref[0:1, :]                              # + b1 (f32)

    # LayerNorm over the (true) last dim, one-pass stats in f32.
    s1 = jnp.sum(h, axis=-1, keepdims=True)
    s2 = jnp.sum(h * h, axis=-1, keepdims=True)
    mu = s1 * inv_h
    var = jnp.maximum(s2 * inv_h - mu * mu, 0.0)          # clamp f32 cancellation
    h = (h - mu) * jax.lax.rsqrt(var + _LN_EPS)
    h = h * vecs_ref[1:2, :] + vecs_ref[2:3, :]           # gamma/beta (pads = 0)

    # ReLU, then fused dueling head (value + advantage - mean(advantage)
    # already folded into wq / bq): bf16 x bf16 -> f32 on the MXU.
    h = jnp.maximum(h, 0.0).astype(jnp.bfloat16)
    out_ref[...] = (jnp.dot(h, wq_ref[...], preferred_element_type=jnp.float32)
                    + bq_ref[...])


def _prepare_inputs(x, params):
    """Pad In/H/O to multiples of 128, fold the dueling head, cast the MXU
    operands to bf16.  Returns exactly the arrays the kernel consumes."""
    B, In = x.shape
    H = params["w1"].shape[1]
    O = params["w2"].shape[1]
    In_p, H_p, O_p = (_round_up(d, 128) for d in (In, H, O))

    # Fold value head + advantage-mean subtraction (exact; post-ReLU is linear).
    wq = params["w2"] + params["w3"] - jnp.mean(params["w2"], axis=1, keepdims=True)
    bq = params["b2"] + params["b3"] - jnp.mean(params["b2"], axis=1, keepdims=True)

    pad2 = lambda a, r, c: jnp.pad(a, ((0, r - a.shape[0]), (0, c - a.shape[1])))

    x_p = pad2(x, B, In_p).astype(jnp.bfloat16)
    w1_p = pad2(params["w1"], In_p, H_p).astype(jnp.bfloat16)
    wq_p = pad2(wq, H_p, O_p).astype(jnp.bfloat16)
    bq_p = pad2(bq, 1, O_p)                                # stays f32
    # b1 / gamma / beta packed into one resident (3, H_p) f32 array.  Pad
    # lanes are 0 for all three (gamma pad MUST be 0 so the pad lanes of the
    # normalized activations are zeroed before the second matmul).
    vecs = pad2(jnp.concatenate(
        [params["b1"], params["gamma"], params["beta"]], axis=0), 3, H_p)
    return x_p, w1_p, vecs, wq_p, bq_p, (In, H, O, In_p, H_p, O_p)


def _pick_block_b(batch, target=512):
    """Batch tile: full batch if tiny; otherwise a multiple of 8, capped by
    `target` and chosen so the grid has >= 2 steps (lets the "parallel" grid
    axis use both TensorCores on v7x; no-op on v5e/v6e)."""
    if batch <= 8:
        return batch
    half = 8 * max(1, (batch // 2) // 8)
    return max(8, min(target, half))


def qnet_duel_forward(x, params, *, block_b=512):
    """x: (B, input_size) float32. params: dict of weights in (in, out) layout."""
    B, _ = x.shape
    x_p, w1_p, vecs, wq_p, bq_p, dims = _prepare_inputs(x, params)
    _, H_t, O_t, In_p, H_p, O_p = dims

    tb = _pick_block_b(B, block_b)
    grid = (pl.cdiv(B, tb),)          # ragged last block handled by Pallas
    const = lambda i: (0, 0)          # weights resident across grid steps

    # Explicit VMEM budget: double-buffered x/out tiles + single-buffered
    # weights + headroom for the f32 intermediates.  Floor 16 MiB (safe on all
    # generations), cap 64 MiB (v7x physical ceiling).
    bf16, f32 = 2, 4
    vmem_bytes = (2 * tb * In_p * bf16 + 2 * tb * O_p * f32
                  + In_p * H_p * bf16 + H_p * O_p * bf16
                  + 8 * H_p * f32 + 8 * O_p * f32
                  + 8 * tb * H_p * f32)
    vmem_limit = int(max(16 << 20, min(vmem_bytes + (4 << 20), 64 << 20)))

    cost = pl.CostEstimate(
        flops=2 * B * (In_p * H_p + H_p * O_p) + 10 * B * H_p,
        transcendentals=B,            # one rsqrt per row
        bytes_accessed=(bf16 * (B * In_p + In_p * H_p + H_p * O_p)
                        + f32 * (B * O_p + 4 * H_p + O_p)),
    )

    out_p = pl.pallas_call(
        functools.partial(_qnet_duel_kernel, inv_h=1.0 / H_t),
        out_shape=jax.ShapeDtypeStruct((B, O_p), jnp.float32),
        grid_spec=pltpu.PrefetchScalarGridSpec(
            num_scalar_prefetch=0,
            grid=grid,
            in_specs=[
                pl.BlockSpec((tb, In_p), lambda i: (i, 0)),                     # x (streamed)
                pl.BlockSpec((In_p, H_p), const, pipeline_mode=pl.Buffered(1)), # w1
                pl.BlockSpec((3, H_p), const, pipeline_mode=pl.Buffered(1)),    # b1/gamma/beta
                pl.BlockSpec((H_p, O_p), const, pipeline_mode=pl.Buffered(1)),  # W_q (folded)
                pl.BlockSpec((1, O_p), const, pipeline_mode=pl.Buffered(1)),    # b_q (folded)
            ],
            out_specs=pl.BlockSpec((tb, O_p), lambda i: (i, 0)),
        ),
        compiler_params=pltpu.CompilerParams(
            dimension_semantics=("parallel",),
            vmem_limit_bytes=vmem_limit,
        ),
        cost_estimate=cost,
    )(x_p, w1_p, vecs, wq_p, bq_p)

    return out_p[:, :O_t]             # drop lane padding


def init_params(key, input_size, hidden_size, output_size):
    """nn.Linear-style init (uniform +-1/sqrt(fan_in)); LayerNorm gamma=1,
    beta=0.  Weights stored (in, out)."""
    k1, k2, k3, k4, k5, k6 = jax.random.split(key, 6)

    def lin(kw, kb, fan_in, fan_out):
        bound = 1.0 / jnp.sqrt(fan_in)
        w = jax.random.uniform(kw, (fan_in, fan_out), jnp.float32, -bound, bound)
        b = jax.random.uniform(kb, (1, fan_out), jnp.float32, -bound, bound)
        return w, b

    w1, b1 = lin(k1, k2, input_size, hidden_size)
    w2, b2 = lin(k3, k4, hidden_size, output_size)
    w3, b3 = lin(k5, k6, hidden_size, 1)
    return {
        "w1": w1, "b1": b1,
        "gamma": jnp.ones((1, hidden_size), jnp.float32),
        "beta": jnp.zeros((1, hidden_size), jnp.float32),
        "w2": w2, "b2": b2,
        "w3": w3, "b3": b3,
    }


def reference_forward(x, p):
    """Pure-JAX f32 reference of the PyTorch forward (un-folded, un-padded)."""
    h = x @ p["w1"] + p["b1"]
    mu = h.mean(-1, keepdims=True)
    var = ((h - mu) ** 2).mean(-1, keepdims=True)
    h = (h - mu) / jnp.sqrt(var + _LN_EPS) * p["gamma"] + p["beta"]
    h = jnp.maximum(h, 0.0)
    adv = h @ p["w2"] + p["b2"]
    val = h @ p["w3"] + p["b3"]
    return val + adv - adv.mean(-1, keepdims=True)


def reference_mixed(x, params):
    """Pure-JAX mirror of the kernel's mixed-precision math (padded operands,
    bf16 matmuls with f32 accumulation, folded head) for a tight check of the
    Pallas plumbing (BlockSpecs, padding, folding)."""
    x_p, w1_p, vecs, wq_p, bq_p, dims = _prepare_inputs(x, params)
    _, H_t, O_t, _, _, _ = dims
    inv_h = 1.0 / H_t
    h = jnp.dot(x_p, w1_p, preferred_element_type=jnp.float32) + vecs[0:1]
    mu = jnp.sum(h, -1, keepdims=True) * inv_h
    var = jnp.maximum(jnp.sum(h * h, -1, keepdims=True) * inv_h - mu * mu, 0.0)
    h = (h - mu) * jax.lax.rsqrt(var + _LN_EPS)
    h = jnp.maximum(h * vecs[1:2] + vecs[2:3], 0.0).astype(jnp.bfloat16)
    q = jnp.dot(h, wq_p, preferred_element_type=jnp.float32) + bq_p
    return q[:, :O_t]


if __name__ == "__main__":
    batch, input_size, hidden_size, output_size = 2, 16, 32, 8

    key = jax.random.PRNGKey(0)
    kx, kp = jax.random.split(key)
    x = jax.random.normal(kx, (batch, input_size), jnp.float32)
    params = init_params(kp, input_size, hidden_size, output_size)

    q = jax.block_until_ready(qnet_duel_forward(x, params))
    assert q.shape == (batch, output_size)

    # Tight check vs a pure-JAX mirror of the kernel's exact mixed-precision
    # math (catches padding / BlockSpec / folding bugs).
    q_mixed = reference_mixed(x, params)
    assert jnp.allclose(q, q_mixed, atol=2e-3, rtol=2e-3), "mismatch vs mixed ref"

    # Loose check vs the full-f32 PyTorch-equivalent forward (bf16 MXU inputs
    # introduce ~1e-2-scale absolute differences at these sizes).
    q_ref = reference_forward(x, params)
    assert jnp.allclose(q, q_ref, atol=1e-1, rtol=1e-1), "mismatch vs f32 ref"

    print("KERNEL_OK")
</pallas_src>

<mosaic_0001>
module attributes {stable_mosaic.version = 11 : i64} {
  func.func @_qnet_duel_kernel(%arg0: i32, %arg1: memref<2x128xbf16, #tpu.memory_space<vmem>>, %arg2: memref<128x128xbf16, #tpu.memory_space<vmem>>, %arg3: memref<3x128xf32, #tpu.memory_space<vmem>>, %arg4: memref<128x128xbf16, #tpu.memory_space<vmem>>, %arg5: memref<1x128xf32, #tpu.memory_space<vmem>>, %arg6: memref<2x128xf32, #tpu.memory_space<vmem>>) attributes {dimension_semantics = [#tpu.dimension_semantics<parallel>], iteration_bounds = array<i64: 1>, scalar_prefetch = 0 : i64, scratch_operands = 0 : i64, tpu.core_type = #tpu.core_type<tc>, window_params = [{transform_indices = @transform_0, window_bounds = array<i64: 2, 128>}, {pipeline_mode = #tpu.pipeline_mode<synchronous>, transform_indices = @transform_1, window_bounds = array<i64: 128, 128>}, {pipeline_mode = #tpu.pipeline_mode<synchronous>, transform_indices = @transform_2, window_bounds = array<i64: 3, 128>}, {pipeline_mode = #tpu.pipeline_mode<synchronous>, transform_indices = @transform_3, window_bounds = array<i64: 128, 128>}, {pipeline_mode = #tpu.pipeline_mode<synchronous>, transform_indices = @transform_4, window_bounds = array<i64: 1, 128>}, {transform_indices = @transform_5, window_bounds = array<i64: 2, 128>}]} {
    %c0 = arith.constant 0 : index
    %c0_0 = arith.constant 0 : index
    %0 = vector.load %arg1[%c0, %c0_0] : memref<2x128xbf16, #tpu.memory_space<vmem>>, vector<2x128xbf16>
    %c0_1 = arith.constant 0 : index
    %c0_2 = arith.constant 0 : index
    %1 = vector.load %arg2[%c0_1, %c0_2] : memref<128x128xbf16, #tpu.memory_space<vmem>>, vector<128x128xbf16>
    %cst = arith.constant dense<0.000000e+00> : vector<2x128xf32>
    %2 = tpu.matmul %0, %1, %cst {dimension_numbers = #tpu.dot_dimension_numbers<[1], [0], [0], [1], [0, 0, 1, 1], [], []>} : vector<2x128xbf16>, vector<128x128xbf16>, vector<2x128xf32> -> vector<2x128xf32>
    %c0_3 = arith.constant 0 : index
    %c0_4 = arith.constant 0 : index
    %3 = vector.load %arg3[%c0_3, %c0_4] : memref<3x128xf32, #tpu.memory_space<vmem>>, vector<1x128xf32>
    %4 = vector.broadcast %3 : vector<1x128xf32> to vector<2x128xf32>
    %5 = arith.addf %2, %4 : vector<2x128xf32>
    %cst_5 = arith.constant dense<0.000000e+00> : vector<2xf32>
    %6 = vector.multi_reduction <add>, %5, %cst_5 [1] : vector<2x128xf32> to vector<2xf32>
    %7 = vector.shape_cast %6 : vector<2xf32> to vector<2x1xf32>
    %8 = arith.mulf %5, %5 : vector<2x128xf32>
    %cst_6 = arith.constant dense<0.000000e+00> : vector<2xf32>
    %9 = vector.multi_reduction <add>, %8, %cst_6 [1] : vector<2x128xf32> to vector<2xf32>
    %10 = vector.shape_cast %9 : vector<2xf32> to vector<2x1xf32>
    %cst_7 = arith.constant 3.125000e-02 : f32
    %11 = vector.broadcast %cst_7 : f32 to vector<2x1xf32>
    %12 = arith.mulf %7, %11 : vector<2x1xf32>
    %cst_8 = arith.constant 3.125000e-02 : f32
    %13 = vector.broadcast %cst_8 : f32 to vector<2x1xf32>
    %14 = arith.mulf %10, %13 : vector<2x1xf32>
    %15 = arith.mulf %12, %12 : vector<2x1xf32>
    %16 = arith.subf %14, %15 : vector<2x1xf32>
    %cst_9 = arith.constant 0.000000e+00 : f32
    %17 = vector.broadcast %cst_9 : f32 to vector<2x1xf32>
    %18 = arith.maximumf %16, %17 : vector<2x1xf32>
    %19 = vector.broadcast %12 : vector<2x1xf32> to vector<2x128xf32>
    %20 = arith.subf %5, %19 : vector<2x128xf32>
    %cst_10 = arith.constant 9.99999974E-6 : f32
    %21 = vector.broadcast %cst_10 : f32 to vector<2x1xf32>
    %22 = arith.addf %18, %21 : vector<2x1xf32>
    %23 = math.rsqrt %22 : vector<2x1xf32>
    %24 = vector.broadcast %23 : vector<2x1xf32> to vector<2x128xf32>
    %25 = arith.mulf %20, %24 : vector<2x128xf32>
    %c1 = arith.constant 1 : index
    %c0_11 = arith.constant 0 : index
    %26 = vector.load %arg3[%c1, %c0_11] : memref<3x128xf32, #tpu.memory_space<vmem>>, vector<1x128xf32>
    %27 = vector.broadcast %26 : vector<1x128xf32> to vector<2x128xf32>
    %28 = arith.mulf %25, %27 : vector<2x128xf32>
    %c2 = arith.constant 2 : index
    %c0_12 = arith.constant 0 : index
    %29 = vector.load %arg3[%c2, %c0_12] : memref<3x128xf32, #tpu.memory_space<vmem>>, vector<1x128xf32>
    %30 = vector.broadcast %29 : vector<1x128xf32> to vector<2x128xf32>
    %31 = arith.addf %28, %30 : vector<2x128xf32>
    %cst_13 = arith.constant 0.000000e+00 : f32
    %32 = vector.broadcast %cst_13 : f32 to vector<2x128xf32>
    %33 = arith.maximumf %31, %32 : vector<2x128xf32>
    %34 = arith.truncf %33 : vector<2x128xf32> to vector<2x128xbf16>
    %c0_14 = arith.constant 0 : index
    %c0_15 = arith.constant 0 : index
    %35 = vector.load %arg4[%c0_14, %c0_15] : memref<128x128xbf16, #tpu.memory_space<vmem>>, vector<128x128xbf16>
    %cst_16 = arith.constant dense<0.000000e+00> : vector<2x128xf32>
    %36 = tpu.matmul %34, %35, %cst_16 {dimension_numbers = #tpu.dot_dimension_numbers<[1], [0], [0], [1], [0, 0, 1, 1], [], []>} : vector<2x128xbf16>, vector<128x128xbf16>, vector<2x128xf32> -> vector<2x128xf32>
    %c0_17 = arith.constant 0 : index
    %c0_18 = arith.constant 0 : index
    %37 = vector.load %arg5[%c0_17, %c0_18] : memref<1x128xf32, #tpu.memory_space<vmem>>, vector<1x128xf32>
    %38 = vector.broadcast %37 : vector<1x128xf32> to vector<2x128xf32>
    %39 = arith.addf %36, %38 : vector<2x128xf32>
    %c0_19 = arith.constant 0 : index
    %c0_20 = arith.constant 0 : index
    %40 = vector.load %arg6[%c0_19, %c0_20] : memref<2x128xf32, #tpu.memory_space<vmem>>, vector<2x128xf32>
    tpu.vector_store %arg6[%c0_19, %c0_20], %39 {strides = array<i32>} : memref<2x128xf32, #tpu.memory_space<vmem>>, vector<2x128xf32>,
    return
  }
  func.func @transform_0(%arg0: i32) -> (i32, i32) {
    %c0_i32 = arith.constant 0 : i32
    %c0_i32_0 = arith.constant 0 : i32
    return %arg0, %c0_i32 : i32, i32
  }
  func.func @transform_1(%arg0: i32) -> (i32, i32) {
    %c0_i32 = arith.constant 0 : i32
    %c0_i32_0 = arith.constant 0 : i32
    %c0_i32_1 = arith.constant 0 : i32
    return %c0_i32, %c0_i32_0 : i32, i32
  }
  func.func @transform_2(%arg0: i32) -> (i32, i32) {
    %c0_i32 = arith.constant 0 : i32
    %c0_i32_0 = arith.constant 0 : i32
    %c0_i32_1 = arith.constant 0 : i32
    return %c0_i32, %c0_i32_0 : i32, i32
  }
  func.func @transform_3(%arg0: i32) -> (i32, i32) {
    %c0_i32 = arith.constant 0 : i32
    %c0_i32_0 = arith.constant 0 : i32
    %c0_i32_1 = arith.constant 0 : i32
    return %c0_i32, %c0_i32_0 : i32, i32
  }
  func.func @transform_4(%arg0: i32) -> (i32, i32) {
    %c0_i32 = arith.constant 0 : i32
    %c0_i32_0 = arith.constant 0 : i32
    %c0_i32_1 = arith.constant 0 : i32
    return %c0_i32, %c0_i32_0 : i32, i32
  }
  func.func @transform_5(%arg0: i32) -> (i32, i32) {
    %c0_i32 = arith.constant 0 : i32
    %c0_i32_0 = arith.constant 0 : i32
    return %arg0, %c0_i32 : i32, i32
  }
}

</mosaic_0001>

<bundles_post_ra>
// kernel: tpu_custom_call.1
= control target key start
LH: loop header
LB: loop body
LE: loop exit
PB: predicated region body
PF: predicated region fallthrough
CT: control target
= control target key end

     0   :  { %10 = vsyncpa [#allocation3], 0  ;;  %s650_s0 = inlined_call_operand.hbm [shape: bf16[2,128], index: 0, kind: input, shape index: {}]   ;;  %s651_s1 = inlined_call_operand.hbm [shape: bf16[128,128], index: 1, kind: input, shape index: {}]   ;;  %s652_s2 = inlined_call_operand.vmem [shape: f32[3,128], index: 2, kind: input, shape index: {}]   ;;  %s653_s3 = inlined_call_operand.hbm [shape: bf16[128,128], index: 3, kind: input, shape index: {}]   ;;  %s654_s4 = inlined_call_operand.vmem [shape: f32[1,128], index: 4, kind: input, shape index: {}]   ;;  %s655_s5 = inlined_call_operand.hbm [shape: f32[2,128], index: 5, kind: output, shape index: {}]  }
   0x1   :  { %11 = vsyncpa [#allocation6], 0 }
   0x2   :  { %12 = vsyncpa [#allocation4], 0  ;;  %s528_s18 = smov [#allocation5]   ;;  %s434_s22 = scalar_lea.hbm %s651_s1, 1024 }
   0x3   :  { %s28_s19 = sshll.u32 %s528_s18, 4  ;;  %p435_p0 = scmp.ne.s32.totalorder %s651_s1, %s434_s22  ;;  %s29_s19 = int_to_ptr.vmem [resolvable:$true] %s28_s19 }
   0x4   :  { %p438_p1 = scmp.lt.u32.totalorder %s434_s22, %s651_s1 }
   0x6   :  { %p440_p2 = pnand %p438_p1, %p435_p0 }
   0x8   :  { %443 = shalt.err (!%p440_p2)
}
   0x9   :  { %s444_s27 = scalar_lea.vmem %s29_s19, 1024  ;;  %p449_p4 = scmp.lt.s32.totalorder %s29_s19, %s29_s19 }
   0xa   :  { %p445_p3 = scmp.ne.s32.totalorder %s29_s19, %s444_s27  ;;  %p450_p5 = scmp.lt.s32.totalorder %s444_s27, %s444_s27 }
   0xc   :  { %p451_p6 = por %p450_p5, %p449_p4 }
   0xe   :  { %p452_p7 = pnand %p451_p6, %p445_p3 }
  0x10   :  { %455 = shalt.err (!%p452_p7)
}
  0x11   :  { %s529_s28 = smov 64   ;;  %s530_s29 = smov 4  }
  0x12   :  { %34 = dma.hbm_to_vmem [thread:$0]  %s651_s1, 1024, %s29_s19, [#allocation6], %s529_s28, %s529_s28, %s530_s29  }
  0x13   :  { %s531_s7 = smov [#allocation2]   ;;  %s532_s9 = smov [#allocation7]  }
  0x14   :  { %s19_s8 = sshll.u32 %s531_s7, 4  ;;  %s42_s10 = sshll.u32 %s532_s9, 4  ;;  %s20_s8 = int_to_ptr.vmem [resolvable:$true] %s19_s8  ;;  %s43_s10 = int_to_ptr.vmem [resolvable:$true] %s42_s10 }
  0x15   :  { %s456_s13 = scalar_lea.hbm %s650_s0, 16 }
  0x16   :  { %p457_p8 = scmp.ne.s32.totalorder %s650_s0, %s456_s13  ;;  %p460_p9 = scmp.lt.u32.totalorder %s456_s13, %s650_s0 }
  0x18   :  { %p462_p10 = pnand %p460_p9, %p457_p8 }
  0x1a   :  { %465 = shalt.err (!%p462_p10)
}
  0x1b   :  { %s466_s1 = scalar_lea.vmem %s20_s8, 16  ;;  %s470_s18 = scalar_lea.vmem %s20_s8, 32 }
  0x1c   :  { %p467_p11 = scmp.ne.s32.totalorder %s20_s8, %s466_s1  ;;  %p471_p12 = scmp.lt.s32.totalorder %s20_s8, %s20_s8 }
  0x1d   :  { %p472_p13 = scmp.lt.s32.totalorder %s470_s18, %s466_s1 }
  0x1f   :  { %p473_p0 = por %p472_p13, %p471_p12 }
  0x21   :  { %p474_p1 = pnand %p473_p0, %p467_p11 }
  0x23   :  { %477 = shalt.err (!%p474_p1)
}
  0x24   :  { %22 = dma.hbm_to_vmem [thread:$0]  %s650_s0, 16, %s20_s8, [#allocation3]  }
  0x25   :  { %s478_s23 = scalar_lea.hbm %s653_s3, 1024 }
  0x26   :  { %p479_p2 = scmp.ne.s32.totalorder %s653_s3, %s478_s23  ;;  %p482_p3 = scmp.lt.u32.totalorder %s478_s23, %s653_s3 }
  0x28   :  { %p484_p4 = pnand %p482_p3, %p479_p2 }
  0x2a   :  { %487 = shalt.err (!%p484_p4)
}
  0x2b   :  { %s488_s30 = scalar_lea.vmem %s43_s10, 1024  ;;  %p493_p6 = scmp.lt.s32.totalorder %s43_s10, %s43_s10 }
  0x2c   :  { %p489_p5 = scmp.ne.s32.totalorder %s43_s10, %s488_s30  ;;  %p494_p7 = scmp.lt.s32.totalorder %s488_s30, %s488_s30 }
  0x2e   :  { %p495_p8 = por %p494_p7, %p493_p6 }
  0x30   :  { %p496_p9 = pnand %p495_p8, %p489_p5 }
  0x32   :  { %499 = shalt.err (!%p496_p9)
}
  0x33   :  { %48 = dma.hbm_to_vmem [thread:$0]  %s653_s3, 1024, %s43_s10, [#allocation6], %s529_s28, %s529_s28, %s530_s29  }
  0x34   :  { %522 = dma.done.wait [#allocation3], 16  }
  0x35   :  { %523 = vsyncadd [#allocation3], 4294967280 }
  0x36   :  { %524 = dma.done.wait [#allocation6], 2048  }
  0x37   :  { %525 = vsyncadd [#allocation6], 4294965248  ;;  %v533_v0 = vmov 0.0   ;;  %vm534_vm0 = vmmov 0   ;;  %v416_v1 = vld [vmem:[#allocation5] sm:$0xff]   ;;  %v417_v2 = vld [vmem:[#allocation5 + $0x8] sm:$0xff]  }
  0x38   :  { %368 = vmatprep.subr.bf16.mxu0 %v533_v0  ;;  %384 = vmatprep.mubr.msk.bf16.mxu0 %vm534_vm0, %v533_v0  ;;  %v418_v3 = vld [vmem:[#allocation5 + $0x10] sm:$0xff]   ;;  %v419_v4 = vld [vmem:[#allocation5 + $0x18] sm:$0xff]   ;;  %v420_v5 = vld [vmem:[#allocation5 + $0x20] sm:$0xff]   ;;  %vm171_vm1 = vcmask 1041408   ;;  %s535_s12 = smov [#allocation8]  }
  0x39   :  { %388 = vmatprep.subr.bf16.mxu1 %v533_v0  ;;  %404 = vmatprep.mubr.msk.bf16.mxu1 %vm534_vm0, %v533_v0  ;;  %v421_v6 = vld [vmem:[#allocation5 + $0x28] sm:$0xff]   ;;  %v422_v7 = vld [vmem:[#allocation5 + $0x30] sm:$0xff]   ;;  %v423_v8 = vld [vmem:[#allocation5 + $0x38] sm:$0xff]   ;;  %s320_s13 = sshll.u32 %s535_s12, 4  ;;  %s321_s13 = int_to_ptr.vmem [resolvable:$true] %s320_s13 }
  0x3a   :  { %369 = vmatpush3.bf16.msra.mxu0 %v416_v1  ;;  %v61_v9 = vld [vmem:[#allocation2] sm:$0x1]  ;;  %v330_v10 = vld [vmem:[%s652_s2] ss:$0 sm:$0xff]  ;;  %v424_v19 = vld [vmem:[#allocation7] sm:$0xff]   ;;  %s500_s14 = scalar_lea.vmem %s321_s13, 32  ;;  %p505_p11 = scmp.lt.s32.totalorder %s321_s13, %s321_s13 }
  0x3b   :  { %370 = vmatprep.subr.bf16.mxu0 %v533_v0  ;;  %389 = vmatpush3.bf16.msra.mxu1 %v424_v19  ;;  %v425_v20 = vld [vmem:[#allocation7 + $0x8] sm:$0xff]   ;;  %v426_v21 = vld [vmem:[#allocation7 + $0x10] sm:$0xff]   ;;  %v427_v22 = vld [vmem:[#allocation7 + $0x18] sm:$0xff]   ;;  %p501_p10 = scmp.ne.s32.totalorder %s321_s13, %s500_s14  ;;  %p506_p12 = scmp.lt.s32.totalorder %s500_s14, %s500_s14 }
  0x3c   :  { %390 = vmatprep.subr.bf16.mxu1 %v533_v0  ;;  %v428_v23 = vld [vmem:[#allocation7 + $0x20] sm:$0xff]   ;;  %v429_v24 = vld [vmem:[#allocation7 + $0x28] sm:$0xff]   ;;  %v430_v25 = vld [vmem:[#allocation7 + $0x30] sm:$0xff]  }
  0x3d   :  { %v431_v26 = vld [vmem:[#allocation7 + $0x38] sm:$0xff]   ;;  %v339_v37 = vld [vmem:[%s652_s2 + $0x1] ss:$0 sm:$0xff]  ;;  %v341_v44 = vld [vmem:[%s654_s4] ss:$0 sm:$0xff]  ;;  %p507_p13 = por %p506_p12, %p505_p11 }
  0x3e   :  { %371 = vmatpush3.bf16.msra.mxu0 %v417_v2  ;;  %v340_v39 = vld [vmem:[%s652_s2 + $0x2] ss:$0 sm:$0xff] }
  0x3f   :  { %372 = vmatprep.subr.bf16.mxu0 %v533_v0  ;;  %391 = vmatpush3.bf16.msra.mxu1 %v425_v20  ;;  %p508_p0 = pnand %p507_p13, %p501_p10 }
  0x40   :  { %392 = vmatprep.subr.bf16.mxu1 %v533_v0 }
  0x42   :  { %373 = vmatpush3.bf16.msra.mxu0 %v418_v3 }
  0x43   :  { %374 = vmatprep.subr.bf16.mxu0 %v533_v0  ;;  %393 = vmatpush3.bf16.msra.mxu1 %v426_v21 }
  0x44   :  { %394 = vmatprep.subr.bf16.mxu1 %v533_v0 }
  0x46   :  { %375 = vmatpush3.bf16.msra.mxu0 %v419_v4 }
  0x47   :  { %376 = vmatprep.subr.bf16.mxu0 %v533_v0  ;;  %395 = vmatpush3.bf16.msra.mxu1 %v427_v22 }
  0x48   :  { %396 = vmatprep.subr.bf16.mxu1 %v533_v0 }
  0x4a   :  { %377 = vmatpush3.bf16.msra.mxu0 %v420_v5 }
  0x4b   :  { %378 = vmatprep.subr.bf16.mxu0 %v533_v0  ;;  %397 = vmatpush3.bf16.msra.mxu1 %v428_v23 }
  0x4c   :  { %398 = vmatprep.subr.bf16.mxu1 %v533_v0 }
  0x4e   :  { %379 = vmatpush3.bf16.msra.mxu0 %v421_v6 }
  0x4f   :  { %380 = vmatprep.subr.bf16.mxu0 %v533_v0  ;;  %399 = vmatpush3.bf16.msra.mxu1 %v429_v24 }
  0x50   :  { %400 = vmatprep.subr.bf16.mxu1 %v533_v0 }
  0x52   :  { %381 = vmatpush3.bf16.msra.mxu0 %v422_v7 }
  0x53   :  { %382 = vmatprep.subr.bf16.mxu0 %v533_v0  ;;  %401 = vmatpush3.bf16.msra.mxu1 %v430_v25 }
  0x54   :  { %402 = vmatprep.subr.bf16.mxu1 %v533_v0 }
  0x56   :  { %383 = vmatpush3.bf16.msra.mxu0 %v423_v8 }
  0x57   :  { %403 = vmatpush3.bf16.msra.mxu1 %v431_v26 }
  0x59   :  { %385 = vmatmul.mubr.bf16.vlgmr.msra.gmra.mrb[0].mxu0 %v61_v9 }
 0x12c   :  { %v165_v11 = vpop.f32.mrb[0].mxu0 }
 0x12d   :  { %v166_v12 = vadd.f32 %v330_v10, %v165_v11  ;;  %v386_v13 = vpop.f32.mrb[1].mxu0 }
 0x12e   :  { %v168_v14 = vpop.f32.mrb[2].mxu0 }
 0x12f   :  { %v387_v15 = vpop.f32.mrb[3].mxu0  ;;  %v172_v16 = vsel %vm171_vm1, %v166_v12, 0.0  ;;  %v175_v17 = vmul.f32 %v166_v12, %v166_v12 }
 0x130   :  { %173 = vadd.xlane.f32.xlu0 %v172_v16 }
 0x131   :  { %v176_v18 = vsel %vm171_vm1, %v175_v17, 0.0 }
 0x134   :  { %177 = vadd.xlane.f32.xlu0 %v176_v18 }
 0x1bd   :  { %v174_v27 = vpop.xlane.xlu0 %173 }
 0x1be   :  { %v179_v28 = vmul.f32 0.03125, %v174_v27 }
 0x1c0   :  { %v181_v30 = vmul.f32 %v179_v28, %v179_v28  ;;  %v184_v35 = vsub.f32 %v166_v12, %v179_v28 }
 0x1c1   :  { %v178_v29 = vpop.xlane.xlu0 %177 }
 0x1c2   :  { %v180_v31 = vmul.f32 0.03125, %v178_v29 }
 0x1c4   :  { %v182_v32 = vsub.f32 %v180_v31, %v181_v30 }
 0x1c6   :  { %v183_v33 = vmax.f32 %v182_v32, 0.0 }
 0x1c8   :  { %v185_v34 = vadd.f32 1e-05, %v183_v33 }
 0x1ca   :  { %432 = vrsqrt.f32 %v185_v34 }
 0x1d4   :  { %v433_v36 = vpop.eup %432 }
 0x1d5   :  { %v187_v38 = vmul.f32 %v433_v36, %v184_v35 }
 0x1d7   :  { %v193_v40 = vmul.f32 %v339_v37, %v187_v38 }
 0x1d9   :  { %v199_v41 = vadd.f32 %v340_v39, %v193_v40 }
 0x1db   :  { %v200_v42 = vmax.f32 %v199_v41, 0.0 }
 0x1dd   :  { %v201_v43 = vpack.c.bf16 %v200_v42, %v200_v42 }
 0x1df   :  { %405 = vmatmul.mubr.bf16.vlgmr.msra.gmra.mrb[0].mxu1 %v201_v43 }
 0x2b2   :  { %v307_v45 = vpop.f32.mrb[0].mxu1 }
 0x2b3   :  { %v308_v46 = vadd.f32 %v341_v44, %v307_v45  ;;  %v406_v47 = vpop.f32.mrb[1].mxu1 }
 0x2b4   :  { %v310_v48 = vpop.f32.mrb[2].mxu1 }
 0x2b5   :  { %313 = vst [vmem:[#allocation8] sm:$0x3] %v308_v46  ;;  %v407_v49 = vpop.f32.mrb[3].mxu1 }
 0x2b6   :  { %511 = shalt.err (!%p508_p0)
}
 0x2b7   :  { %s512_s4 = scalar_lea.hbm %s655_s5, 32 }
 0x2b8   :  { %p513_p1 = scmp.ne.s32.totalorder %s655_s5, %s512_s4  ;;  %p516_p2 = scmp.lt.u32.totalorder %s512_s4, %s655_s5 }
 0x2ba   :  { %p518_p3 = pnand %p516_p2, %p513_p1 }
 0x2bc   :  { %521 = shalt.err (!%p518_p3)
}
 0x2bd   :  { %323 = dma.vmem_to_hbm [thread:$0]  %s321_s13, 32, %s655_s5, [#allocation4]  }
 0x2be   :  { %526 = dma.done.wait [#allocation4], 32  }
 0x2bf   :  { %527 = vsyncadd [#allocation4], 4294967264 }
 0x2c0   :  { %327 = vsyncpa [#allocation3], 1 }
 0x2c1   :  { %328 = vsyncpa [#allocation6], 1 }
 0x2c2   :  { %329 = vsyncpa [#allocation4], 1 }

</bundles_post_ra>
